<compile_context>
chip_gen: v6e
topology: v6e:2x2x1
jax: 0.10.0
libtpu: 0.0.40
codegen_flags: <defaults>
</compile_context>

<pallas_src>
import jax
import jax.numpy as jnp
from jax.experimental import pallas as pl
from jax.experimental.pallas import tpu as pltpu

_LANE = 128


def _skip_block_kernel(w_ref, x_ref, cw_ref, cb_ref, o_ref):
    """One (C, t_hw) tile of the weighted op mixture.

    w_ref  : SMEM (3,)        f32  -- mixture weights [w_none, w_skip, w_conv1x1]
    x_ref  : VMEM (C, t_hw)        -- input tile (channels on sublanes, space on lanes)
    cw_ref : VMEM (C, C)           -- 1x1 conv weight
    cb_ref : VMEM (C, 1)       f32 -- 1x1 conv bias (broadcast over lanes)
    o_ref  : VMEM (C, t_hw)        -- output tile
    """
    w_skip = w_ref[1]
    w_conv = w_ref[2]

    # op 0 'none': contributes exactly zero -> dropped (dead work otherwise).
    # op 1 'skip_connect': identity.  If w_skip == 0 this term is exactly 0,
    # matching the PyTorch `if w != 0` gate (differs only for NaN/inf weights).
    acc = w_skip * x_ref[...].astype(jnp.float32)

    # op 2 'conv_1x1': pointwise conv == channel matmul (+ per-channel bias).
    # Exactly one of the two branches below stores o_ref (single store per tile).
    @pl.when(w_conv != 0.0)
    def _():
        # Scale the small (C,C) weight / (C,1) bias, not the (C,t_hw) result.
        w_scaled = (w_conv * cw_ref[...].astype(jnp.float32)).astype(cw_ref.dtype)
        b_scaled = w_conv * cb_ref[...].astype(jnp.float32)
        y = jnp.dot(w_scaled, x_ref[...], preferred_element_type=jnp.float32)
        o_ref[...] = (acc + y + b_scaled).astype(o_ref.dtype)

    @pl.when(w_conv == 0.0)
    def _():
        o_ref[...] = acc.astype(o_ref.dtype)


def skip_block(x_nchw, weights, conv_w, conv_b):
    """x_nchw: (N, C, H, W); weights: (3,);
    conv_w: (C_out, C_in, 1, 1) (PyTorch layout); conv_b: (C_out,)."""
    N, C, H, W = x_nchw.shape
    HW = H * W

    # TODO(synk): assumes the conv_1x1 candidate preserves channel count
    # (C_out == C_in == C), as required for the ops to be summable with identity.
    if conv_w.shape[0] != C or conv_w.shape[1] != C:
        raise ValueError("skip_block assumes C_out == C_in == C for conv_1x1")

    # Channels-on-sublanes, space-on-lanes view (free reshape, no transpose).
    x3 = x_nchw.reshape(N, C, HW)
    itemsize = jnp.dtype(x3.dtype).itemsize

    cw_mat = conv_w[:, :, 0, 0]                       # (C, C)
    if x3.dtype == jnp.bfloat16:
        cw_mat = cw_mat.astype(jnp.bfloat16)          # native bf16 MXU path
    cb_col = conv_b.reshape(C, 1).astype(jnp.float32)  # per-channel bias
    w_smem = jnp.asarray(weights, dtype=jnp.float32)

    # ---- Tile sizing from a per-generation VMEM byte budget -----------------
    try:
        phys_vmem = int(pltpu.get_tpu_info().vmem_capacity_bytes)
    except Exception:
        phys_vmem = 64 * 1024 * 1024                  # conservative (v7x per-TC)
    budget = (3 * phys_vmem) // 4                     # ~48 MiB v7x, ~96 MiB v5e/v6e

    const_bytes = 2 * (C * C + C) * itemsize          # conv W + b (worst case 2x buffered)
    tile_budget = max(budget - const_bytes, 4 * 1024 * 1024)
    # 4 resident (C, t_hw) tiles: x and out, each double-buffered.
    t_hw_budget = tile_budget // (4 * C * itemsize)

    if t_hw_budget >= HW:
        t_hw = HW                                     # whole sample per block
        if N == 1 and HW > _LANE:
            # keep >= 2 grid steps so a megacore (v7x) keeps both TCs busy
            t_hw = pl.cdiv(pl.cdiv(HW, 2), _LANE) * _LANE
    else:
        t_hw = max(_LANE, (t_hw_budget // (_LANE)) * _LANE)
    num_hw = pl.cdiv(HW, t_hw)
    grid = (N, num_hw)

    need = (4 * C * t_hw + 2 * (C * C + C)) * itemsize + (1 << 20)
    vmem_limit = int(min(budget, max(32 * 1024 * 1024, 2 * need)))
    vmem_limit = int(max(vmem_limit, need))

    # ---- pallas_call (constant blocks single-buffered when supported) -------
    def _make_call(single_buffer_consts):
        if single_buffer_consts:
            cw_spec = pl.BlockSpec((C, C), lambda n, j: (0, 0),
                                   pipeline_mode=pl.Buffered(1))
            cb_spec = pl.BlockSpec((C, 1), lambda n, j: (0, 0),
                                   pipeline_mode=pl.Buffered(1))
        else:
            cw_spec = pl.BlockSpec((C, C), lambda n, j: (0, 0))
            cb_spec = pl.BlockSpec((C, 1), lambda n, j: (0, 0))
        return pl.pallas_call(
            _skip_block_kernel,
            out_shape=jax.ShapeDtypeStruct((N, C, HW), x3.dtype),
            grid=grid,
            in_specs=[
                pl.BlockSpec(memory_space=pltpu.SMEM),                  # weights
                pl.BlockSpec((None, C, t_hw), lambda n, j: (n, 0, j)),  # x tile
                cw_spec,                                                # conv W
                cb_spec,                                                # conv b
            ],
            out_specs=pl.BlockSpec((None, C, t_hw), lambda n, j: (n, 0, j)),
            compiler_params=pltpu.CompilerParams(
                dimension_semantics=("parallel", "parallel"),
                vmem_limit_bytes=vmem_limit),
        )

    try:
        out3 = _make_call(True)(w_smem, x3, cw_mat, cb_col)
    except Exception:
        # pipeline_mode=pl.Buffered(1) unsupported in this JAX build -> default buffering.
        out3 = _make_call(False)(w_smem, x3, cw_mat, cb_col)

    return out3.reshape(N, C, H, W)


def _reference(x_nchw, weights, conv_w, conv_b):
    """Pure-JAX reference of the assumed SkipBlock forward."""
    N, C, H, W = x_nchw.shape
    x3 = x_nchw.reshape(N, C, H * W).astype(jnp.float32)
    conv = jnp.einsum('oc,ncs->nos', conv_w[:, :, 0, 0].astype(jnp.float32), x3) \
        + conv_b.astype(jnp.float32)[None, :, None]
    out = (weights[0] * jnp.zeros_like(x3)       # 'none'
           + weights[1] * x3                     # 'skip_connect'
           + weights[2] * conv)                  # 'conv_1x1'
    return out.reshape(N, C, H, W)


if __name__ == "__main__":
    key = jax.random.PRNGKey(0)
    k_x, k_cw, k_cb = jax.random.split(key, 3)

    N, C, H, W = 2, 8, 16, 16
    x = jax.random.normal(k_x, (N, C, H, W), dtype=jnp.float32)
    # mixture weights for ['none', 'skip_connect', 'conv_1x1']
    weights = jnp.array([0.0, 0.7, 0.3], dtype=jnp.float32)
    conv_w = jax.random.normal(k_cw, (C, C, 1, 1), dtype=jnp.float32) * 0.1
    conv_b = jax.random.normal(k_cb, (C,), dtype=jnp.float32) * 0.1

    out = jax.block_until_ready(skip_block(x, weights, conv_w, conv_b))
    ref = _reference(x, weights, conv_w, conv_b)
    assert out.shape == (N, C, H, W)
    assert jnp.allclose(out, ref, atol=1e-5, rtol=1e-5)

    # Also exercise the w_conv == 0 branch (the PyTorch `if w != 0` gate).
    weights2 = jnp.array([0.0, 1.3, 0.0], dtype=jnp.float32)
    out2 = jax.block_until_ready(skip_block(x, weights2, conv_w, conv_b))
    ref2 = _reference(x, weights2, conv_w, conv_b)
    assert jnp.allclose(out2, ref2, atol=1e-5, rtol=1e-5)

    print("KERNEL_OK")
</pallas_src>

<mosaic_0001>
module attributes {stable_mosaic.version = 11 : i64} {
  func.func @_skip_block_kernel(%arg0: i32, %arg1: i32, %arg2: memref<3xf32, #tpu.memory_space<smem>>, %arg3: memref<1x8x256xf32, #tpu.memory_space<vmem>>, %arg4: memref<8x8xf32, #tpu.memory_space<vmem>>, %arg5: memref<8x1xf32, #tpu.memory_space<vmem>>, %arg6: memref<1x8x256xf32, #tpu.memory_space<vmem>>) attributes {dimension_semantics = [#tpu.dimension_semantics<parallel>, #tpu.dimension_semantics<parallel>], iteration_bounds = array<i64: 2, 1>, scalar_prefetch = 0 : i64, scratch_operands = 0 : i64, tpu.core_type = #tpu.core_type<tc>, window_params = [{transform_indices = @transform_0, window_bounds = array<i64: 3>}, {transform_indices = @transform_1, window_bounds = array<i64: 1, 8, 256>}, {pipeline_mode = #tpu.pipeline_mode<synchronous>, transform_indices = @transform_2, window_bounds = array<i64: 8, 8>}, {pipeline_mode = #tpu.pipeline_mode<synchronous>, transform_indices = @transform_3, window_bounds = array<i64: 8, 1>}, {transform_indices = @transform_4, window_bounds = array<i64: 1, 8, 256>}]} {
    %c1 = arith.constant 1 : index
    %0 = memref.load %arg2[%c1] : memref<3xf32, #tpu.memory_space<smem>>
    %c2 = arith.constant 2 : index
    %1 = memref.load %arg2[%c2] : memref<3xf32, #tpu.memory_space<smem>>
    %c0 = arith.constant 0 : index
    %c0_0 = arith.constant 0 : index
    %c0_1 = arith.constant 0 : index
    %2 = vector.load %arg3[%c0, %c0_0, %c0_1] : memref<1x8x256xf32, #tpu.memory_space<vmem>>, vector<1x8x256xf32>
    %3 = vector.shape_cast %2 : vector<1x8x256xf32> to vector<8x256xf32>
    %4 = vector.broadcast %0 : f32 to vector<8x256xf32>
    %5 = arith.mulf %4, %3 : vector<8x256xf32>
    %cst = arith.constant 0.000000e+00 : f32
    %6 = arith.cmpf one, %1, %cst : f32
    %7 = arith.extui %6 : i1 to i32
    %c0_i32 = arith.constant 0 : i32
    %8 = arith.cmpi ne, %7, %c0_i32 : i32
    scf.if %8 {
      %c0_4 = arith.constant 0 : index
      %c0_5 = arith.constant 0 : index
      %12 = vector.load %arg4[%c0_4, %c0_5] : memref<8x8xf32, #tpu.memory_space<vmem>>, vector<8x8xf32>
      %13 = vector.broadcast %1 : f32 to vector<8x8xf32>
      %14 = arith.mulf %13, %12 : vector<8x8xf32>
      %c0_6 = arith.constant 0 : index
      %c0_7 = arith.constant 0 : index
      %15 = vector.load %arg5[%c0_6, %c0_7] : memref<8x1xf32, #tpu.memory_space<vmem>>, vector<8x1xf32>
      %16 = vector.broadcast %1 : f32 to vector<8x1xf32>
      %17 = arith.mulf %16, %15 : vector<8x1xf32>
      %c0_8 = arith.constant 0 : index
      %c0_9 = arith.constant 0 : index
      %c0_10 = arith.constant 0 : index
      %18 = vector.load %arg3[%c0_8, %c0_9, %c0_10] : memref<1x8x256xf32, #tpu.memory_space<vmem>>, vector<1x8x256xf32>
      %19 = vector.shape_cast %18 : vector<1x8x256xf32> to vector<8x256xf32>
      %cst_11 = arith.constant dense<0.000000e+00> : vector<8x256xf32>
      %20 = tpu.matmul %14, %19, %cst_11 {dimension_numbers = #tpu.dot_dimension_numbers<[1], [0], [0], [1], [0, 0, 1, 1], [], []>} : vector<8x8xf32>, vector<8x256xf32>, vector<8x256xf32> -> vector<8x256xf32>
      %21 = arith.addf %5, %20 : vector<8x256xf32>
      %22 = vector.broadcast %17 : vector<8x1xf32> to vector<8x256xf32>
      %23 = arith.addf %21, %22 : vector<8x256xf32>
      %c0_12 = arith.constant 0 : index
      %c0_13 = arith.constant 0 : index
      %c0_14 = arith.constant 0 : index
      %24 = vector.load %arg6[%c0_12, %c0_13, %c0_14] : memref<1x8x256xf32, #tpu.memory_space<vmem>>, vector<1x8x256xf32>
      %25 = vector.shape_cast %24 : vector<1x8x256xf32> to vector<8x256xf32>
      %26 = vector.shape_cast %23 : vector<8x256xf32> to vector<1x8x256xf32>
      tpu.vector_store %arg6[%c0_12, %c0_13, %c0_14], %26 {strides = array<i32>} : memref<1x8x256xf32, #tpu.memory_space<vmem>>, vector<1x8x256xf32>,
    } else {
    }
    %cst_2 = arith.constant 0.000000e+00 : f32
    %9 = arith.cmpf oeq, %1, %cst_2 : f32
    %10 = arith.extui %9 : i1 to i32
    %c0_i32_3 = arith.constant 0 : i32
    %11 = arith.cmpi ne, %10, %c0_i32_3 : i32
    scf.if %11 {
      %c0_4 = arith.constant 0 : index
      %c0_5 = arith.constant 0 : index
      %c0_6 = arith.constant 0 : index
      %12 = vector.load %arg6[%c0_4, %c0_5, %c0_6] : memref<1x8x256xf32, #tpu.memory_space<vmem>>, vector<1x8x256xf32>
      %13 = vector.shape_cast %12 : vector<1x8x256xf32> to vector<8x256xf32>
      %14 = vector.shape_cast %5 : vector<8x256xf32> to vector<1x8x256xf32>
      tpu.vector_store %arg6[%c0_4, %c0_5, %c0_6], %14 {strides = array<i32>} : memref<1x8x256xf32, #tpu.memory_space<vmem>>, vector<1x8x256xf32>,
    } else {
    }
    return
  }
  func.func @transform_0(%arg0: i32, %arg1: i32) -> i32 {
    %c0_i32 = arith.constant 0 : i32
    %c0_i32_0 = arith.constant 0 : i32
    return %c0_i32 : i32
  }
  func.func @transform_1(%arg0: i32, %arg1: i32) -> (i32, i32, i32) {
    %c0_i32 = arith.constant 0 : i32
    %c0_i32_0 = arith.constant 0 : i32
    return %arg0, %c0_i32, %arg1 : i32, i32, i32
  }
  func.func @transform_2(%arg0: i32, %arg1: i32) -> (i32, i32) {
    %c0_i32 = arith.constant 0 : i32
    %c0_i32_0 = arith.constant 0 : i32
    %c0_i32_1 = arith.constant 0 : i32
    return %c0_i32, %c0_i32_0 : i32, i32
  }
  func.func @transform_3(%arg0: i32, %arg1: i32) -> (i32, i32) {
    %c0_i32 = arith.constant 0 : i32
    %c0_i32_0 = arith.constant 0 : i32
    %c0_i32_1 = arith.constant 0 : i32
    return %c0_i32, %c0_i32_0 : i32, i32
  }
  func.func @transform_4(%arg0: i32, %arg1: i32) -> (i32, i32, i32) {
    %c0_i32 = arith.constant 0 : i32
    %c0_i32_0 = arith.constant 0 : i32
    return %arg0, %c0_i32, %arg1 : i32, i32, i32
  }
}

module attributes {stable_mosaic.version = 11 : i64} {
  func.func @_skip_block_kernel(%arg0: i32, %arg1: i32, %arg2: memref<3xf32, #tpu.memory_space<smem>>, %arg3: memref<1x8x256xf32, #tpu.memory_space<vmem>>, %arg4: memref<8x8xf32, #tpu.memory_space<vmem>>, %arg5: memref<8x1xf32, #tpu.memory_space<vmem>>, %arg6: memref<1x8x256xf32, #tpu.memory_space<vmem>>) attributes {dimension_semantics = [#tpu.dimension_semantics<parallel>, #tpu.dimension_semantics<parallel>], iteration_bounds = array<i64: 2, 1>, scalar_prefetch = 0 : i64, scratch_operands = 0 : i64, tpu.core_type = #tpu.core_type<tc>, window_params = [{transform_indices = @transform_0, window_bounds = array<i64: 3>}, {transform_indices = @transform_1, window_bounds = array<i64: 1, 8, 256>}, {pipeline_mode = #tpu.pipeline_mode<synchronous>, transform_indices = @transform_2, window_bounds = array<i64: 8, 8>}, {pipeline_mode = #tpu.pipeline_mode<synchronous>, transform_indices = @transform_3, window_bounds = array<i64: 8, 1>}, {transform_indices = @transform_4, window_bounds = array<i64: 1, 8, 256>}]} {
    %c1 = arith.constant 1 : index
    %0 = memref.load %arg2[%c1] : memref<3xf32, #tpu.memory_space<smem>>
    %c2 = arith.constant 2 : index
    %1 = memref.load %arg2[%c2] : memref<3xf32, #tpu.memory_space<smem>>
    %c0 = arith.constant 0 : index
    %c0_0 = arith.constant 0 : index
    %c0_1 = arith.constant 0 : index
    %2 = vector.load %arg3[%c0, %c0_0, %c0_1] : memref<1x8x256xf32, #tpu.memory_space<vmem>>, vector<1x8x256xf32>
    %3 = vector.shape_cast %2 : vector<1x8x256xf32> to vector<8x256xf32>
    %4 = vector.broadcast %0 : f32 to vector<8x256xf32>
    %5 = arith.mulf %4, %3 : vector<8x256xf32>
    %cst = arith.constant 0.000000e+00 : f32
    %6 = arith.cmpf one, %1, %cst : f32
    %7 = arith.extui %6 : i1 to i32
    %c0_i32 = arith.constant 0 : i32
    %8 = arith.cmpi ne, %7, %c0_i32 : i32
    scf.if %8 {
      %c0_4 = arith.constant 0 : index
      %c0_5 = arith.constant 0 : index
      %12 = vector.load %arg4[%c0_4, %c0_5] : memref<8x8xf32, #tpu.memory_space<vmem>>, vector<8x8xf32>
      %13 = vector.broadcast %1 : f32 to vector<8x8xf32>
      %14 = arith.mulf %13, %12 : vector<8x8xf32>
      %c0_6 = arith.constant 0 : index
      %c0_7 = arith.constant 0 : index
      %15 = vector.load %arg5[%c0_6, %c0_7] : memref<8x1xf32, #tpu.memory_space<vmem>>, vector<8x1xf32>
      %16 = vector.broadcast %1 : f32 to vector<8x1xf32>
      %17 = arith.mulf %16, %15 : vector<8x1xf32>
      %c0_8 = arith.constant 0 : index
      %c0_9 = arith.constant 0 : index
      %c0_10 = arith.constant 0 : index
      %18 = vector.load %arg3[%c0_8, %c0_9, %c0_10] : memref<1x8x256xf32, #tpu.memory_space<vmem>>, vector<1x8x256xf32>
      %19 = vector.shape_cast %18 : vector<1x8x256xf32> to vector<8x256xf32>
      %cst_11 = arith.constant dense<0.000000e+00> : vector<8x256xf32>
      %20 = tpu.matmul %14, %19, %cst_11 {dimension_numbers = #tpu.dot_dimension_numbers<[1], [0], [0], [1], [0, 0, 1, 1], [], []>} : vector<8x8xf32>, vector<8x256xf32>, vector<8x256xf32> -> vector<8x256xf32>
      %21 = arith.addf %5, %20 : vector<8x256xf32>
      %22 = vector.broadcast %17 : vector<8x1xf32> to vector<8x256xf32>
      %23 = arith.addf %21, %22 : vector<8x256xf32>
      %c0_12 = arith.constant 0 : index
      %c0_13 = arith.constant 0 : index
      %c0_14 = arith.constant 0 : index
      %24 = vector.load %arg6[%c0_12, %c0_13, %c0_14] : memref<1x8x256xf32, #tpu.memory_space<vmem>>, vector<1x8x256xf32>
      %25 = vector.shape_cast %24 : vector<1x8x256xf32> to vector<8x256xf32>
      %26 = vector.shape_cast %23 : vector<8x256xf32> to vector<1x8x256xf32>
      tpu.vector_store %arg6[%c0_12, %c0_13, %c0_14], %26 {strides = array<i32>} : memref<1x8x256xf32, #tpu.memory_space<vmem>>, vector<1x8x256xf32>,
    } else {
    }
    %cst_2 = arith.constant 0.000000e+00 : f32
    %9 = arith.cmpf oeq, %1, %cst_2 : f32
    %10 = arith.extui %9 : i1 to i32
    %c0_i32_3 = arith.constant 0 : i32
    %11 = arith.cmpi ne, %10, %c0_i32_3 : i32
    scf.if %11 {
      %c0_4 = arith.constant 0 : index
      %c0_5 = arith.constant 0 : index
      %c0_6 = arith.constant 0 : index
      %12 = vector.load %arg6[%c0_4, %c0_5, %c0_6] : memref<1x8x256xf32, #tpu.memory_space<vmem>>, vector<1x8x256xf32>
      %13 = vector.shape_cast %12 : vector<1x8x256xf32> to vector<8x256xf32>
      %14 = vector.shape_cast %5 : vector<8x256xf32> to vector<1x8x256xf32>
      tpu.vector_store %arg6[%c0_4, %c0_5, %c0_6], %14 {strides = array<i32>} : memref<1x8x256xf32, #tpu.memory_space<vmem>>, vector<1x8x256xf32>,
    } else {
    }
    return
  }
  func.func @transform_0(%arg0: i32, %arg1: i32) -> i32 {
    %c0_i32 = arith.constant 0 : i32
    %c0_i32_0 = arith.constant 0 : i32
    return %c0_i32 : i32
  }
  func.func @transform_1(%arg0: i32, %arg1: i32) -> (i32, i32, i32) {
    %c0_i32 = arith.constant 0 : i32
    %c0_i32_0 = arith.constant 0 : i32
    return %arg0, %c0_i32, %arg1 : i32, i32, i32
  }
  func.func @transform_2(%arg0: i32, %arg1: i32) -> (i32, i32) {
    %c0_i32 = arith.constant 0 : i32
    %c0_i32_0 = arith.constant 0 : i32
    %c0_i32_1 = arith.constant 0 : i32
    return %c0_i32, %c0_i32_0 : i32, i32
  }
  func.func @transform_3(%arg0: i32, %arg1: i32) -> (i32, i32) {
    %c0_i32 = arith.constant 0 : i32
    %c0_i32_0 = arith.constant 0 : i32
    %c0_i32_1 = arith.constant 0 : i32
    return %c0_i32, %c0_i32_0 : i32, i32
  }
  func.func @transform_4(%arg0: i32, %arg1: i32) -> (i32, i32, i32) {
    %c0_i32 = arith.constant 0 : i32
    %c0_i32_0 = arith.constant 0 : i32
    return %arg0, %c0_i32, %arg1 : i32, i32, i32
  }
}

</mosaic_0001>

<bundles_post_ra>
// kernel: tpu_custom_call.1
= control target key start
LH: loop header
LB: loop body
LE: loop exit
PB: predicated region body
PF: predicated region fallthrough
CT: control target
= control target key end

     0   :  { %9 = vsyncpa [#allocation5], 0  ;;  %s907_s0 = inlined_call_operand.vmem [shape: f32[3], index: 0, kind: input, shape index: {}]   ;;  %s908_s1 = inlined_call_operand.hbm [shape: f32[2,8,256], index: 1, kind: input, shape index: {}]   ;;  %s909_s2 = inlined_call_operand.vmem [shape: f32[8,8], index: 2, kind: input, shape index: {}]   ;;  %s910_s3 = inlined_call_operand.vmem [shape: f32[8,1], index: 3, kind: input, shape index: {}]   ;;  %s911_s4 = inlined_call_operand.hbm [shape: f32[2,8,256], index: 4, kind: output, shape index: {}]  }
   0x1   :  { %10 = vsyncpa [#allocation3], 0 }
   0x2   :  { %12 = vsyncpa [#allocation3 + $0x1], 0 }
   0x3   :  { %13 = vsyncpa [#allocation4], 0 }
   0x4   :  { %15 = vsyncpa [#allocation4 + $0x1], 0  ;;  %s728_s15 = smov 0   ;;  %s730_s16 = smov 0  }
   0x5   :  { %s732_s17 = smov 0   ;;  %s734_s18 = smov 0  }
   0x6   :  { %s736_s19 = smov 0   ;;  %s738_s20 = smov 0  }
   0x7 LB: > { %s471_s21 = sadd.s32 4294967295, %s696_s20   ;;  %s472_s22 = sadd.s32 4294967294, %s696_s20   ;;  %s696_s20 = sphi %s738_s20, %s21_s20   ;;  %s692_s19 = sphi %s736_s19, %s928_s19   ;;  %s688_s18 = sphi %s734_s18, %s927_s18   ;;  %s684_s17 = sphi %s732_s17, %s926_s17   ;;  %s680_s16 = sphi %s730_s16, %s925_s16   ;;  %s676_s15 = sphi %s728_s15, %s924_s15  }
   0x8   : > { %p76_p0 = scmp.ne.s32.totalorder %s680_s16, %s676_s15  ;;  %p762_p1 = scmp.eq.s32.totalorder %s471_s21, 0 }
   0x9   : > { %p766_p2 = scmp.eq.s32.totalorder %s471_s21, 1  ;;  %p150_p3 = scmp.eq.s32.totalorder %s472_s22, 1 }
   0xa   : > { %p772_p4 = por %p762_p1, %p76_p0  ;;  %p473_p5 = scmp.ge.s32.totalorder %s696_s20, 1 }
   0xb   : > { %p777_p6 = por %p150_p3, %p76_p0  ;;  %p157_p7 = scmp.lt.s32.totalorder %s696_s20, 3 }
   0xc   : > { %s915_s25 = scalar_select %p772_p4, 1, 0 }
   0xd   : > { %s916_s26 = scalar_select %p777_p6, 1, 0 }
   0xe   : > { %s170_s29 = sshll.u32 %s907_s0, 4  ;;  %p785_p8 = pnand %p473_p5, %p157_p7  ;;  %s171_s29 = int_to_ptr.vmem [resolvable:$true] %s170_s29 }
   0xf   : > { %s33_s6 = sadd.s32 1, %s692_s19  ;;  %s63_s7 = sadd.s32 1, %s684_s17 }
  0x10   : > { %p501_p10 = pneg %p785_p8  ;;  %p35_p12 = scmp.ge.s32.totalorder %s33_s6, 2 }
  0x11   : > { %s569_s8 = scalar_lea.vmem %s171_s29, 16  ;;  %p577_p7 = scmp.lt.s32.totalorder %s171_s29, %s171_s29 }
  0x12   : > { %p794_p11 = pnand %p501_p10, %p762_p1  ;;  %p570_p13 = scmp.ne.s32.totalorder %s171_s29, %s569_s8 }
  0x13   : > { %p578_p6 = scmp.lt.s32.totalorder %s569_s8, %s569_s8 }
  0x14   : > { %p571_p0 = pneg %p794_p11 }
  0x15   : > { %p579_p9 = por %p578_p6, %p577_p7 }
  0x16   : > { %p572_p3 = pnand %p571_p0, %p570_p13 }
  0x18   : > { %p573_p5 = pneg %p572_p3 }
  0x1a   : > { %p580_p4 = pnand %p579_p9, %p573_p5 }
  0x1c   : > { %583 = shalt.err (!%p580_p4)
}
  0x1d   : > { %s698_s9 = smov [#allocation2]   ;;  %s930_s6 = smov (%p35_p12, %s33_s6), 0 }
  0x1e   : > { %504 = dma.vmem_to_smem (!%p794_p11), %s171_s29, 16, %s698_s9, [#allocation5]  }
  0x1f   : > { %p70_p10 = scmp.ne.s32.totalorder %s684_s17, %s680_s16  ;;  %p71_p6 = scmp.eq.s32.totalorder %s696_s20, 0 }
  0x20   : > { %s58_s10 = ssub.s32 %s692_s19, %s930_s6  ;;  %p514_p4 = scmp.lt.s32.totalorder %s696_s20, 2 }
  0x21   : > { %p61_p9 = scmp.eq.s32.totalorder %s58_s10, 0  ;;  %p72_p13 = por %p71_p6, %p70_p10 }
  0x22   : > { %p814_p0 = por %p766_p2, %p70_p10  ;;  %s187_s12 = sand.u32 1, %s684_s17  }
  0x23   : > { %s820_s13 = scalar_select %p61_p9, %s684_s17, %s63_s7  }
  0x24   : > { %s476_s14 = sshll.u32 %s187_s12, 4  ;;  %s491_s21 = sshll.u32 %s692_s19, 8 }
  0x25   : > { %s199_s28 = scalar_lea.hbm %s908_s1, %s491_s21  ;;  %s191_s29 = scalar_lea.vmem [#allocation6], %s476_s14 }
  0x26   : > { %s201_s5 = sshll.u32 %s191_s29, 4  ;;  %p826_p11 = pnand %p514_p4, %p72_p13  ;;  %s202_s5 = int_to_ptr.vmem [resolvable:$true] %s201_s5 }
  0x27   : > { %s188_s24 = scalar_lea.sflag [#allocation3], %s187_s12  ;;  %s597_s9 = scalar_lea.vmem %s202_s5, 256 }
  0x28   : > { %p586_p2 = pneg %p826_p11  ;;  %p598_p12 = scmp.ne.s32.totalorder %s202_s5, %s597_s9 }
  0x29   : > { %s699_s7 = smov [#allocation6]  }
  0x2a   : > { %p600_p3 = pnand %p598_p12, %p586_p2  ;;  %s602_s10 = sshll.u32 %s699_s7, 4  ;;  %s603_s10 = int_to_ptr.vmem [resolvable:$false] %s602_s10 }
  0x2b   : > { %s604_s22 = scalar_lea.vmem %s603_s10, 512  ;;  %p605_p7 = scmp.lt.s32.totalorder %s202_s5, %s603_s10 }
  0x2c   : > { %p601_p5 = pneg %p600_p3  ;;  %p606_p10 = scmp.lt.s32.totalorder %s604_s22, %s597_s9 }
  0x2e   : > { %p607_p6 = por %p606_p10, %p605_p7 }
  0x30   : > { %p608_p9 = pnand %p607_p6, %p601_p5 }
  0x32   : > { %611 = shalt.err (!%p608_p9)
}
  0x33   : > { %508 = dma.hbm_to_vmem [thread:$0]  (!%p826_p11), %s199_s28, 256, %s202_s5, %s188_s24  }
  0x34   : > { %210 = sbr.rel (%p785_p8) target bundleno = 306 (0x132), region = 36 }
  0x39   : > { %663 = dma.done.wait (%p762_p1), [#allocation5], 16  }
  0x3a   : > { %665 = vsyncadd (%p762_p1), [#allocation5], 4294967280  ;;  %s841_s12 = sand.u32 1, %s680_s16   ;;  %p921_p4 = scmp.ne.s32.totalorder %s915_s25, 0 }
  0x3b   : > { %s481_s14 = sshll.u32 %s841_s12, 4  ;;  %s217_s21 = scalar_lea.sflag [#allocation3], %s841_s12 }
  0x3c   : > { %s220_s27 = scalar_lea.vmem [#allocation6], %s481_s14 }
  0x3d   : > { %667 = dma.done.wait (%p921_p4), %s217_s21, 256  }
  0x3e   : > { %669 = vsyncadd (%p921_p4), %s217_s21, 4294967040 }
  0x3f   : > { %225 = sfence }
  0x40   : > { %s483_s30 = sld [smem:[#allocation2 + $0x1]]  ;;  %v250_v0 = vld [vmem:[%s220_s27] sm:$0xff]  ;;  %v251_v1 = vld [vmem:[%s220_s27 + $0x8] sm:$0xff]  ;;  %s852_s23 = scalar_lea.vmem [#allocation7], %s481_s14 }
  0x41   : > { %s849_s28 = sld [smem:[#allocation2 + $0x2]] }
  0x46   : > { %v252_v2 = vstv %s483_s30 }
  0x47   : > { %v253_v3 = vmul.f32 %v252_v2, %v250_v0  ;;  %v254_v4 = vmul.f32 %v252_v2, %v251_v1  ;;  %p255_p1 = scmp.ne.f32.partialorder %s849_s28, 0.0 }
  0x48   : > { %v265_v5 = vld [vmem:[%s220_s27 + $0x8] sm:$0xff] (%p255_p1)  ;;  %v264_v6 = vld [vmem:[%s220_s27] sm:$0xff] (%p255_p1)  ;;  %v260_v8 = vstv (%p255_p1), %s849_s28  ;;  %vm266_vm0 = vcmask (%p255_p1), 64512   ;;  %v700_v9 = vmov (%p255_p1), 0.0   ;;  %v701_v12 = vmov (%p255_p1), 0  }
  0x49   : > { %258 = sbr.rel (!%p255_p1) target bundleno = 276 (0x114), region = 48  ;;  %v259_v7 = vld [vmem:[%s909_s2] sm:$0xff] (%p255_p1)  ;;  %300 = vmatprep.subr.mxu0 (%p255_p1), %v265_v5  ;;  %334 = vmatprep.mubr.f32.mxu0 (%p255_p1), %v700_v9 }
  0x4a   : > { %v261_v10 = vmul.f32 (%p255_p1), %v260_v8, %v259_v7  ;;  %v262_v11 = vld [vmem:[%s910_s3] sm:$0xff] (%p255_p1)  ;;  %301 = vmatpush1.msra.mxu0 (%p255_p1), %v264_v6  ;;  %568 = vset.pattern.permute.xlu0 (%p255_p1), %v701_v12 }
  0x4b   : > { %v263_v13 = vmul.f32 (%p255_p1), %v262_v11, %v260_v8 }
  0x4c   : > { %485 = vmatmul.mubr.msk.f32.vlgmr.msra.gmra.mxu0 (%p255_p1), %vm266_vm0, %v261_v10 }
  0x4d   : > { %345 = vperm.xlu0 (%p255_p1), %568, %v263_v13  }
  0xc8   : > { %v346_v15 = vpop.permute.xlu0 %345 }
 0x10c   : > { %v336_v14 = vpop.f32.mrf.mxu0 }
 0x10d   : > { %v341_v16 = vadd.f32 %v336_v14, %v253_v3 }
 0x10e   : > { %v338_v17 = vpop.f32.mrf.mxu0 }
 0x10f   : > { %v348_v18 = vadd.f32 %v346_v15, %v341_v16  ;;  %v342_v19 = vadd.f32 %v338_v17, %v254_v4 }
 0x111   : > { %350 = vst [vmem:[%s852_s23] sm:$0xff] %v348_v18  ;;  %v349_v20 = vadd.f32 %v346_v15, %v342_v19 }
 0x113   : > { %351 = vst [vmem:[%s852_s23 + $0x8] sm:$0xff] %v349_v20 }
 0x114 PF: > { %p352_p8 = scmp.eq.f32.partialorder %s849_s28, 0.0 }
 0x115   : > { %356 = vst [vmem:[%s852_s23] sm:$0xff] (%p352_p8), %v253_v3  ;;  %357 = vst [vmem:[%s852_s23 + $0x8] sm:$0xff] (%p352_p8), %v254_v4 }
 0x116   : > { %355 = sbr.rel (!%p352_p8) target bundleno = 283 (0x11b), region = 52 }
 0x11b PF: > { %s492_s24 = sshll.u32 %s688_s18, 8  ;;  %s375_s22 = sshll.u32 %s852_s23, 4  ;;  %s376_s22 = int_to_ptr.vmem [resolvable:$true] %s375_s22 }
 0x11c   : > { %s373_s10 = scalar_lea.hbm %s911_s4, %s492_s24  ;;  %s359_s14 = scalar_lea.sflag [#allocation4], %s841_s12 }
 0x11d   : > { %s612_s21 = scalar_lea.vmem %s376_s22, 256  ;;  %s702_s27 = smov [#allocation7]  }
 0x11e   : > { %p613_p13 = scmp.ne.s32.totalorder %s376_s22, %s612_s21  ;;  %s616_s30 = sshll.u32 %s702_s27, 4  ;;  %s617_s30 = int_to_ptr.vmem [resolvable:$false] %s616_s30 }
 0x11f   : > { %s618_s28 = scalar_lea.vmem %s617_s30, 512  ;;  %p619_p12 = scmp.lt.s32.totalorder %s376_s22, %s617_s30 }
 0x120   : > { %p614_p11 = pnand %p613_p13, %p814_p0  ;;  %p620_p3 = scmp.lt.s32.totalorder %s618_s28, %s612_s21 }
 0x122   : > { %p615_p2 = pneg %p614_p11  ;;  %p621_p5 = por %p620_p3, %p619_p12 }
 0x124   : > { %p622_p7 = pnand %p621_p5, %p615_p2 }
 0x126   : > { %625 = shalt.err (!%p622_p7)
}
 0x127   : > { %s626_s18 = scalar_lea.hbm %s373_s10, 256  ;;  %s630_s29 = scalar_lea.hbm %s911_s4, 512 }
 0x128   : > { %p627_p10 = scmp.ne.s32.totalorder %s373_s10, %s626_s18  ;;  %p631_p4 = scmp.lt.s32.totalorder %s373_s10, %s911_s4 }
 0x129   : > { %p632_p1 = scmp.lt.s32.totalorder %s630_s29, %s626_s18 }
 0x12a   : > { %p628_p6 = pnand %p627_p10, %p814_p0 }
 0x12b   : > { %p633_p8 = por %p632_p1, %p631_p4 }
 0x12c   : > { %p629_p9 = pneg %p628_p6 }
 0x12e   : > { %p634_p13 = pnand %p633_p8, %p629_p9 }
 0x130   : > { %637 = shalt.err (!%p634_p13)
}
 0x131   : > { %499 = dma.vmem_to_hbm [thread:$0]  (%p814_p0), %s376_s22, 256, %s373_s10, %s359_s14  }
 0x132 PF: > { %s387_s8 = sand.u32 1, %s676_s15   ;;  %p922_p11 = scmp.ne.s32.totalorder %s916_s26, 0 }
 0x133   : > { %p923_p2 = scmp.ge.s32.totalorder %s696_s20, 2  ;;  %s388_s24 = scalar_lea.sflag [#allocation4], %s387_s8 }
 0x135   : > { %p510_p12 = pnand %p923_p2, %p922_p11 }
 0x137   : > { %p511_p3 = pneg %p510_p12 }
 0x139   : > { %671 = dma.done.wait (%p511_p3), %s388_s24, 256  }
 0x13a   : > { %673 = vsyncadd (%p511_p3), %s388_s24, 4294967040  ;;  %s21_s20 = sadd.s32 1, %s696_s20   ;;  %s924_s15 = smov %s680_s16 }
 0x13b   : > { %p18_p5 = scmp.ge.s32.totalorder %s21_s20, 4   ;;  %s925_s16 = smov %s684_s17 }
 0x13c   : > { %s926_s17 = smov %s820_s13  ;;  %s927_s18 = smov %s692_s19 }
 0x13d   : > { %s928_s19 = smov %s930_s6  ;;  %20 = sbr.rel (!%p18_p5) target bundleno = 7 (0x7), region = 94 }
 0x142   :  { %393 = vsyncpa [#allocation3], 1 }
 0x143   :  { %395 = vsyncpa [#allocation3 + $0x1], 1 }
 0x144   :  { %396 = vsyncpa [#allocation4], 1 }
 0x145   :  { %398 = vsyncpa [#allocation4 + $0x1], 1 }
 0x146   :  { %399 = vsyncpa [#allocation5], 1 }
 0x147   :  { %401 = vsyncpa [#allocation5 + $0x1], 1 }

// kernel: tpu_custom_call.1
= control target key start
LH: loop header
LB: loop body
LE: loop exit
PB: predicated region body
PF: predicated region fallthrough
CT: control target
= control target key end

     0   :  { %9 = vsyncpa [#allocation5], 0  ;;  %s907_s0 = inlined_call_operand.vmem [shape: f32[3], index: 0, kind: input, shape index: {}]   ;;  %s908_s1 = inlined_call_operand.hbm [shape: f32[2,8,256], index: 1, kind: input, shape index: {}]   ;;  %s909_s2 = inlined_call_operand.vmem [shape: f32[8,8], index: 2, kind: input, shape index: {}]   ;;  %s910_s3 = inlined_call_operand.vmem [shape: f32[8,1], index: 3, kind: input, shape index: {}]   ;;  %s911_s4 = inlined_call_operand.hbm [shape: f32[2,8,256], index: 4, kind: output, shape index: {}]  }
   0x1   :  { %10 = vsyncpa [#allocation3], 0 }
   0x2   :  { %12 = vsyncpa [#allocation3 + $0x1], 0 }
   0x3   :  { %13 = vsyncpa [#allocation4], 0 }
   0x4   :  { %15 = vsyncpa [#allocation4 + $0x1], 0  ;;  %s728_s15 = smov 0   ;;  %s730_s16 = smov 0  }
   0x5   :  { %s732_s17 = smov 0   ;;  %s734_s18 = smov 0  }
   0x6   :  { %s736_s19 = smov 0   ;;  %s738_s20 = smov 0  }
   0x7 LB: > { %s471_s21 = sadd.s32 4294967295, %s696_s20   ;;  %s472_s22 = sadd.s32 4294967294, %s696_s20   ;;  %s696_s20 = sphi %s738_s20, %s21_s20   ;;  %s692_s19 = sphi %s736_s19, %s928_s19   ;;  %s688_s18 = sphi %s734_s18, %s927_s18   ;;  %s684_s17 = sphi %s732_s17, %s926_s17   ;;  %s680_s16 = sphi %s730_s16, %s925_s16   ;;  %s676_s15 = sphi %s728_s15, %s924_s15  }
   0x8   : > { %p76_p0 = scmp.ne.s32.totalorder %s680_s16, %s676_s15  ;;  %p762_p1 = scmp.eq.s32.totalorder %s471_s21, 0 }
   0x9   : > { %p766_p2 = scmp.eq.s32.totalorder %s471_s21, 1  ;;  %p150_p3 = scmp.eq.s32.totalorder %s472_s22, 1 }
   0xa   : > { %p772_p4 = por %p762_p1, %p76_p0  ;;  %p473_p5 = scmp.ge.s32.totalorder %s696_s20, 1 }
   0xb   : > { %p777_p6 = por %p150_p3, %p76_p0  ;;  %p157_p7 = scmp.lt.s32.totalorder %s696_s20, 3 }
   0xc   : > { %s915_s25 = scalar_select %p772_p4, 1, 0 }
   0xd   : > { %s916_s26 = scalar_select %p777_p6, 1, 0 }
   0xe   : > { %s170_s29 = sshll.u32 %s907_s0, 4  ;;  %p785_p8 = pnand %p473_p5, %p157_p7  ;;  %s171_s29 = int_to_ptr.vmem [resolvable:$true] %s170_s29 }
   0xf   : > { %s33_s6 = sadd.s32 1, %s692_s19  ;;  %s63_s7 = sadd.s32 1, %s684_s17 }
  0x10   : > { %p501_p10 = pneg %p785_p8  ;;  %p35_p12 = scmp.ge.s32.totalorder %s33_s6, 2 }
  0x11   : > { %s569_s8 = scalar_lea.vmem %s171_s29, 16  ;;  %p577_p7 = scmp.lt.s32.totalorder %s171_s29, %s171_s29 }
  0x12   : > { %p794_p11 = pnand %p501_p10, %p762_p1  ;;  %p570_p13 = scmp.ne.s32.totalorder %s171_s29, %s569_s8 }
  0x13   : > { %p578_p6 = scmp.lt.s32.totalorder %s569_s8, %s569_s8 }
  0x14   : > { %p571_p0 = pneg %p794_p11 }
  0x15   : > { %p579_p9 = por %p578_p6, %p577_p7 }
  0x16   : > { %p572_p3 = pnand %p571_p0, %p570_p13 }
  0x18   : > { %p573_p5 = pneg %p572_p3 }
  0x1a   : > { %p580_p4 = pnand %p579_p9, %p573_p5 }
  0x1c   : > { %583 = shalt.err (!%p580_p4)
}
  0x1d   : > { %s698_s9 = smov [#allocation2]   ;;  %s930_s6 = smov (%p35_p12, %s33_s6), 0 }
  0x1e   : > { %504 = dma.vmem_to_smem (!%p794_p11), %s171_s29, 16, %s698_s9, [#allocation5]  }
  0x1f   : > { %p70_p10 = scmp.ne.s32.totalorder %s684_s17, %s680_s16  ;;  %p71_p6 = scmp.eq.s32.totalorder %s696_s20, 0 }
  0x20   : > { %s58_s10 = ssub.s32 %s692_s19, %s930_s6  ;;  %p514_p4 = scmp.lt.s32.totalorder %s696_s20, 2 }
  0x21   : > { %p61_p9 = scmp.eq.s32.totalorder %s58_s10, 0  ;;  %p72_p13 = por %p71_p6, %p70_p10 }
  0x22   : > { %p814_p0 = por %p766_p2, %p70_p10  ;;  %s187_s12 = sand.u32 1, %s684_s17  }
  0x23   : > { %s820_s13 = scalar_select %p61_p9, %s684_s17, %s63_s7  }
  0x24   : > { %s476_s14 = sshll.u32 %s187_s12, 4  ;;  %s491_s21 = sshll.u32 %s692_s19, 8 }
  0x25   : > { %s199_s28 = scalar_lea.hbm %s908_s1, %s491_s21  ;;  %s191_s29 = scalar_lea.vmem [#allocation6], %s476_s14 }
  0x26   : > { %s201_s5 = sshll.u32 %s191_s29, 4  ;;  %p826_p11 = pnand %p514_p4, %p72_p13  ;;  %s202_s5 = int_to_ptr.vmem [resolvable:$true] %s201_s5 }
  0x27   : > { %s188_s24 = scalar_lea.sflag [#allocation3], %s187_s12  ;;  %s597_s9 = scalar_lea.vmem %s202_s5, 256 }
  0x28   : > { %p586_p2 = pneg %p826_p11  ;;  %p598_p12 = scmp.ne.s32.totalorder %s202_s5, %s597_s9 }
  0x29   : > { %s699_s7 = smov [#allocation6]  }
  0x2a   : > { %p600_p3 = pnand %p598_p12, %p586_p2  ;;  %s602_s10 = sshll.u32 %s699_s7, 4  ;;  %s603_s10 = int_to_ptr.vmem [resolvable:$false] %s602_s10 }
  0x2b   : > { %s604_s22 = scalar_lea.vmem %s603_s10, 512  ;;  %p605_p7 = scmp.lt.s32.totalorder %s202_s5, %s603_s10 }
  0x2c   : > { %p601_p5 = pneg %p600_p3  ;;  %p606_p10 = scmp.lt.s32.totalorder %s604_s22, %s597_s9 }
  0x2e   : > { %p607_p6 = por %p606_p10, %p605_p7 }
  0x30   : > { %p608_p9 = pnand %p607_p6, %p601_p5 }
  0x32   : > { %611 = shalt.err (!%p608_p9)
}
  0x33   : > { %508 = dma.hbm_to_vmem [thread:$0]  (!%p826_p11), %s199_s28, 256, %s202_s5, %s188_s24  }
  0x34   : > { %210 = sbr.rel (%p785_p8) target bundleno = 306 (0x132), region = 36 }
  0x39   : > { %663 = dma.done.wait (%p762_p1), [#allocation5], 16  }
  0x3a   : > { %665 = vsyncadd (%p762_p1), [#allocation5], 4294967280  ;;  %s841_s12 = sand.u32 1, %s680_s16   ;;  %p921_p4 = scmp.ne.s32.totalorder %s915_s25, 0 }
  0x3b   : > { %s481_s14 = sshll.u32 %s841_s12, 4  ;;  %s217_s21 = scalar_lea.sflag [#allocation3], %s841_s12 }
  0x3c   : > { %s220_s27 = scalar_lea.vmem [#allocation6], %s481_s14 }
  0x3d   : > { %667 = dma.done.wait (%p921_p4), %s217_s21, 256  }
  0x3e   : > { %669 = vsyncadd (%p921_p4), %s217_s21, 4294967040 }
  0x3f   : > { %225 = sfence }
  0x40   : > { %s483_s30 = sld [smem:[#allocation2 + $0x1]]  ;;  %v250_v0 = vld [vmem:[%s220_s27] sm:$0xff]  ;;  %v251_v1 = vld [vmem:[%s220_s27 + $0x8] sm:$0xff]  ;;  %s852_s23 = scalar_lea.vmem [#allocation7], %s481_s14 }
  0x41   : > { %s849_s28 = sld [smem:[#allocation2 + $0x2]] }
  0x46   : > { %v252_v2 = vstv %s483_s30 }
  0x47   : > { %v253_v3 = vmul.f32 %v252_v2, %v250_v0  ;;  %v254_v4 = vmul.f32 %v252_v2, %v251_v1  ;;  %p255_p1 = scmp.ne.f32.partialorder %s849_s28, 0.0 }
  0x48   : > { %v265_v5 = vld [vmem:[%s220_s27 + $0x8] sm:$0xff] (%p255_p1)  ;;  %v264_v6 = vld [vmem:[%s220_s27] sm:$0xff] (%p255_p1)  ;;  %v260_v8 = vstv (%p255_p1), %s849_s28  ;;  %vm266_vm0 = vcmask (%p255_p1), 64512   ;;  %v700_v9 = vmov (%p255_p1), 0.0   ;;  %v701_v12 = vmov (%p255_p1), 0  }
  0x49   : > { %258 = sbr.rel (!%p255_p1) target bundleno = 276 (0x114), region = 48  ;;  %v259_v7 = vld [vmem:[%s909_s2] sm:$0xff] (%p255_p1)  ;;  %300 = vmatprep.subr.mxu0 (%p255_p1), %v265_v5  ;;  %334 = vmatprep.mubr.f32.mxu0 (%p255_p1), %v700_v9 }
  0x4a   : > { %v261_v10 = vmul.f32 (%p255_p1), %v260_v8, %v259_v7  ;;  %v262_v11 = vld [vmem:[%s910_s3] sm:$0xff] (%p255_p1)  ;;  %301 = vmatpush1.msra.mxu0 (%p255_p1), %v264_v6  ;;  %568 = vset.pattern.permute.xlu0 (%p255_p1), %v701_v12 }
  0x4b   : > { %v263_v13 = vmul.f32 (%p255_p1), %v262_v11, %v260_v8 }
  0x4c   : > { %485 = vmatmul.mubr.msk.f32.vlgmr.msra.gmra.mxu0 (%p255_p1), %vm266_vm0, %v261_v10 }
  0x4d   : > { %345 = vperm.xlu0 (%p255_p1), %568, %v263_v13  }
  0xc8   : > { %v346_v15 = vpop.permute.xlu0 %345 }
 0x10c   : > { %v336_v14 = vpop.f32.mrf.mxu0 }
 0x10d   : > { %v341_v16 = vadd.f32 %v336_v14, %v253_v3 }
 0x10e   : > { %v338_v17 = vpop.f32.mrf.mxu0 }
 0x10f   : > { %v348_v18 = vadd.f32 %v346_v15, %v341_v16  ;;  %v342_v19 = vadd.f32 %v338_v17, %v254_v4 }
 0x111   : > { %350 = vst [vmem:[%s852_s23] sm:$0xff] %v348_v18  ;;  %v349_v20 = vadd.f32 %v346_v15, %v342_v19 }
 0x113   : > { %351 = vst [vmem:[%s852_s23 + $0x8] sm:$0xff] %v349_v20 }
 0x114 PF: > { %p352_p8 = scmp.eq.f32.partialorder %s849_s28, 0.0 }
 0x115   : > { %356 = vst [vmem:[%s852_s23] sm:$0xff] (%p352_p8), %v253_v3  ;;  %357 = vst [vmem:[%s852_s23 + $0x8] sm:$0xff] (%p352_p8), %v254_v4 }
 0x116   : > { %355 = sbr.rel (!%p352_p8) target bundleno = 283 (0x11b), region = 52 }
 0x11b PF: > { %s492_s24 = sshll.u32 %s688_s18, 8  ;;  %s375_s22 = sshll.u32 %s852_s23, 4  ;;  %s376_s22 = int_to_ptr.vmem [resolvable:$true] %s375_s22 }
 0x11c   : > { %s373_s10 = scalar_lea.hbm %s911_s4, %s492_s24  ;;  %s359_s14 = scalar_lea.sflag [#allocation4], %s841_s12 }
 0x11d   : > { %s612_s21 = scalar_lea.vmem %s376_s22, 256  ;;  %s702_s27 = smov [#allocation7]  }
 0x11e   : > { %p613_p13 = scmp.ne.s32.totalorder %s376_s22, %s612_s21  ;;  %s616_s30 = sshll.u32 %s702_s27, 4  ;;  %s617_s30 = int_to_ptr.vmem [resolvable:$false] %s616_s30 }
 0x11f   : > { %s618_s28 = scalar_lea.vmem %s617_s30, 512  ;;  %p619_p12 = scmp.lt.s32.totalorder %s376_s22, %s617_s30 }
 0x120   : > { %p614_p11 = pnand %p613_p13, %p814_p0  ;;  %p620_p3 = scmp.lt.s32.totalorder %s618_s28, %s612_s21 }
 0x122   : > { %p615_p2 = pneg %p614_p11  ;;  %p621_p5 = por %p620_p3, %p619_p12 }
 0x124   : > { %p622_p7 = pnand %p621_p5, %p615_p2 }
 0x126   : > { %625 = shalt.err (!%p622_p7)
}
 0x127   : > { %s626_s18 = scalar_lea.hbm %s373_s10, 256  ;;  %s630_s29 = scalar_lea.hbm %s911_s4, 512 }
 0x128   : > { %p627_p10 = scmp.ne.s32.totalorder %s373_s10, %s626_s18  ;;  %p631_p4 = scmp.lt.s32.totalorder %s373_s10, %s911_s4 }
 0x129   : > { %p632_p1 = scmp.lt.s32.totalorder %s630_s29, %s626_s18 }
 0x12a   : > { %p628_p6 = pnand %p627_p10, %p814_p0 }
 0x12b   : > { %p633_p8 = por %p632_p1, %p631_p4 }
 0x12c   : > { %p629_p9 = pneg %p628_p6 }
 0x12e   : > { %p634_p13 = pnand %p633_p8, %p629_p9 }
 0x130   : > { %637 = shalt.err (!%p634_p13)
}
 0x131   : > { %499 = dma.vmem_to_hbm [thread:$0]  (%p814_p0), %s376_s22, 256, %s373_s10, %s359_s14  }
 0x132 PF: > { %s387_s8 = sand.u32 1, %s676_s15   ;;  %p922_p11 = scmp.ne.s32.totalorder %s916_s26, 0 }
 0x133   : > { %p923_p2 = scmp.ge.s32.totalorder %s696_s20, 2  ;;  %s388_s24 = scalar_lea.sflag [#allocation4], %s387_s8 }
 0x135   : > { %p510_p12 = pnand %p923_p2, %p922_p11 }
 0x137   : > { %p511_p3 = pneg %p510_p12 }
 0x139   : > { %671 = dma.done.wait (%p511_p3), %s388_s24, 256  }
 0x13a   : > { %673 = vsyncadd (%p511_p3), %s388_s24, 4294967040  ;;  %s21_s20 = sadd.s32 1, %s696_s20   ;;  %s924_s15 = smov %s680_s16 }
 0x13b   : > { %p18_p5 = scmp.ge.s32.totalorder %s21_s20, 4   ;;  %s925_s16 = smov %s684_s17 }
 0x13c   : > { %s926_s17 = smov %s820_s13  ;;  %s927_s18 = smov %s692_s19 }
 0x13d   : > { %s928_s19 = smov %s930_s6  ;;  %20 = sbr.rel (!%p18_p5) target bundleno = 7 (0x7), region = 94 }
 0x142   :  { %393 = vsyncpa [#allocation3], 1 }
 0x143   :  { %395 = vsyncpa [#allocation3 + $0x1], 1 }
 0x144   :  { %396 = vsyncpa [#allocation4], 1 }
 0x145   :  { %398 = vsyncpa [#allocation4 + $0x1], 1 }
 0x146   :  { %399 = vsyncpa [#allocation5], 1 }
 0x147   :  { %401 = vsyncpa [#allocation5 + $0x1], 1 }

</bundles_post_ra>
